<compile_context>
chip_gen: v7x
topology: tpu7x:2x2x1
jax: 0.10.0
libtpu: 0.0.40
codegen_flags: <defaults>
</compile_context>

<pallas_src>
import functools

import jax
import jax.numpy as jnp
from jax.experimental import pallas as pl
from jax.experimental.pallas import tpu as pltpu


def _round_up(x, m):
    return ((x + m - 1) // m) * m


def _conv_bn_relu_kernel(p_ref, w_ref, scale_ref, shift_ref, o_ref):
    # (tm, K) @ (K, Coutp) on the MXU, f32 accumulation.
    acc = jnp.dot(p_ref[...], w_ref[...], preferred_element_type=jnp.float32)
    # Fused BatchNorm (per-channel affine, conv bias folded in) + ReLU, in f32.
    y = acc * scale_ref[...] + shift_ref[...]
    o_ref[...] = jnp.maximum(y, 0.0).astype(o_ref.dtype)


def _pick_tm(m_rows):
    # Big tiles amortise per-grid-step pipeline overhead; keep >=2 steps when
    # there is enough work (v7x has 2 TensorCores); cap well under VMEM.
    if m_rows <= 128:
        return max(8, _round_up(m_rows, 8))
    return min(2048, _round_up(pl.cdiv(m_rows, 2), 128))


@functools.partial(jax.jit, static_argnames=("stride", "eps"))
def conv_block(x, conv_w, conv_b, gamma, beta, running_mean, running_var, *,
               stride, eps=1e-5):
    """Fused Conv2d(3x3, stride, padding=0) + BatchNorm2d(eval) + ReLU.

    x:      (N, Cin, H, W)      f32, NCHW (PyTorch layout)
    conv_w: (Cout, Cin, 3, 3)   f32, OIHW (PyTorch layout)
    conv_b, gamma, beta, running_mean, running_var: (Cout,)
    """
    N, Cin, H, W = x.shape
    Cout, Cin_w, KH, KW = conv_w.shape
    assert Cin == Cin_w and KH == 3 and KW == 3
    Hout = (H - KH) // stride + 1
    Wout = (W - KW) // stride + 1
    K = Cin * KH * KW
    M = N * Hout * Wout

    # TODO(synk): training-mode BatchNorm (batch statistics) would need a
    # second reduction pass over the conv output; eval-mode running stats are
    # what is fused here.
    bn_scale = gamma / jnp.sqrt(running_var + eps)                  # (Cout,)
    bn_shift = beta - running_mean * bn_scale + conv_b * bn_scale   # (Cout,)

    # im2col in NHWC ordering: patches[(n,ho,wo), (kh,kw,c)], bf16 operands.
    x_nhwc = x.transpose(0, 2, 3, 1).astype(jnp.bfloat16)           # (N,H,W,Cin)
    taps = []
    for kh in range(KH):
        for kw in range(KW):
            taps.append(x_nhwc[:, kh:kh + (Hout - 1) * stride + 1:stride,
                               kw:kw + (Wout - 1) * stride + 1:stride, :])
    patches = jnp.stack(taps, axis=3).reshape(M, K)                 # (M, K) bf16

    # Weight as (K, Cout) matching the (kh, kw, c) ordering above; pad Cout to
    # a multiple of 128 so the kernel output (and its stores) are lane-dense.
    Coutp = _round_up(Cout, 128)
    w_mat = conv_w.transpose(2, 3, 1, 0).reshape(K, Cout).astype(jnp.bfloat16)
    w_mat = jnp.pad(w_mat, ((0, 0), (0, Coutp - Cout)))
    scale_row = jnp.pad(bn_scale, (0, Coutp - Cout)).reshape(1, Coutp)
    shift_row = jnp.pad(bn_shift, (0, Coutp - Cout)).reshape(1, Coutp)

    tm = _pick_tm(M)
    Mpad = _round_up(M, tm)
    if Mpad != M:
        patches = jnp.pad(patches, ((0, Mpad - M), (0, 0)))

    cols = pl.pallas_call(
        _conv_bn_relu_kernel,
        out_shape=jax.ShapeDtypeStruct((Mpad, Coutp), jnp.float32),
        grid_spec=pltpu.PrefetchScalarGridSpec(
            num_scalar_prefetch=0,
            grid=(Mpad // tm,),
            in_specs=[
                pl.BlockSpec((tm, K), lambda i: (i, 0)),
                # Constant blocks: index_map is (0, 0) every step, so they are
                # DMA'd once and stay resident across the grid.
                pl.BlockSpec((K, Coutp), lambda i: (0, 0)),
                pl.BlockSpec((1, Coutp), lambda i: (0, 0)),
                pl.BlockSpec((1, Coutp), lambda i: (0, 0)),
            ],
            out_specs=pl.BlockSpec((tm, Coutp), lambda i: (i, 0)),
        ),
        compiler_params=pltpu.CompilerParams(
            dimension_semantics=("parallel",)),
    )(patches, w_mat, scale_row, shift_row)

    # Drop M/Cout padding, NHWC -> NCHW (public interface matches PyTorch).
    return cols[:M, :Cout].reshape(N, Hout, Wout, Cout).transpose(0, 3, 1, 2)


def _reference(x, conv_w, conv_b, gamma, beta, mean, var, stride, eps=1e-5):
    """Pure-JAX f32 ConvBlock forward: Conv2d -> BatchNorm2d(eval) -> ReLU."""
    y = jax.lax.conv_general_dilated(
        x, conv_w, window_strides=(stride, stride), padding="VALID",
        dimension_numbers=("NCHW", "OIHW", "NCHW"))
    y = y + conv_b[None, :, None, None]
    y = (y - mean[None, :, None, None]) * (
        gamma[None, :, None, None] / jnp.sqrt(var[None, :, None, None] + eps))
    y = y + beta[None, :, None, None]
    return jnp.maximum(y, 0.0)


if __name__ == "__main__":
    # ConvBlock(in_channels=4, out_channels=8, stride=2) on a (2, 4, 16, 16) input.
    in_channels, out_channels = 4, 8
    N, H, W = 2, 16, 16

    key = jax.random.PRNGKey(0)
    ks = jax.random.split(key, 7)
    x = jax.random.normal(ks[0], (N, in_channels, H, W), dtype=jnp.float32)

    # Deterministic synthetic parameters (PyTorch-style init ranges).
    fan_in = in_channels * 3 * 3
    bound = 1.0 / (fan_in ** 0.5)
    conv_w = jax.random.uniform(ks[1], (out_channels, in_channels, 3, 3),
                                jnp.float32, -bound, bound)
    conv_b = jax.random.uniform(ks[2], (out_channels,), jnp.float32, -bound, bound)
    gamma = jax.random.uniform(ks[3], (out_channels,), jnp.float32, 0.5, 1.5)
    beta = jax.random.uniform(ks[4], (out_channels,), jnp.float32, -0.5, 0.5)
    running_mean = jax.random.uniform(ks[5], (out_channels,), jnp.float32, -0.5, 0.5)
    running_var = jax.random.uniform(ks[6], (out_channels,), jnp.float32, 0.5, 1.5)

    # stride=2: module config; stride=1 additionally exercises a 2-step grid.
    for stride in (2, 1):
        y = conv_block(x, conv_w, conv_b, gamma, beta,
                       running_mean, running_var, stride=stride)
        y = jax.block_until_ready(y)
        y_ref = _reference(x, conv_w, conv_b, gamma, beta,
                           running_mean, running_var, stride)
        Hout = (H - 3) // stride + 1
        Wout = (W - 3) // stride + 1
        assert y.shape == (N, out_channels, Hout, Wout)
        err = float(jnp.max(jnp.abs(y - y_ref)))
        # bf16 matmul operands vs f32 reference -> loose-ish tolerance.
        assert jnp.allclose(y, y_ref, atol=3e-2, rtol=3e-2), (stride, err)

    print("KERNEL_OK")
</pallas_src>

<mosaic_0001>
module attributes {stable_mosaic.version = 11 : i64} {
  func.func @_conv_bn_relu_kernel(%arg0: i32, %arg1: memref<104x36xbf16, #tpu.memory_space<vmem>>, %arg2: memref<36x128xbf16, #tpu.memory_space<vmem>>, %arg3: memref<1x128xf32, #tpu.memory_space<vmem>>, %arg4: memref<1x128xf32, #tpu.memory_space<vmem>>, %arg5: memref<104x128xf32, #tpu.memory_space<vmem>>) attributes {dimension_semantics = [#tpu.dimension_semantics<parallel>], iteration_bounds = array<i64: 1>, scalar_prefetch = 0 : i64, scratch_operands = 0 : i64, tpu.core_type = #tpu.core_type<tc>, window_params = [{transform_indices = @transform_0, window_bounds = array<i64: 104, 36>}, {pipeline_mode = #tpu.pipeline_mode<synchronous>, transform_indices = @transform_1, window_bounds = array<i64: 36, 128>}, {pipeline_mode = #tpu.pipeline_mode<synchronous>, transform_indices = @transform_2, window_bounds = array<i64: 1, 128>}, {pipeline_mode = #tpu.pipeline_mode<synchronous>, transform_indices = @transform_3, window_bounds = array<i64: 1, 128>}, {transform_indices = @transform_4, window_bounds = array<i64: 104, 128>}]} {
    %c0 = arith.constant 0 : index
    %c0_0 = arith.constant 0 : index
    %0 = vector.load %arg1[%c0, %c0_0] : memref<104x36xbf16, #tpu.memory_space<vmem>>, vector<104x36xbf16>
    %c0_1 = arith.constant 0 : index
    %c0_2 = arith.constant 0 : index
    %1 = vector.load %arg2[%c0_1, %c0_2] : memref<36x128xbf16, #tpu.memory_space<vmem>>, vector<36x128xbf16>
    %cst = arith.constant dense<0.000000e+00> : vector<104x128xf32>
    %2 = tpu.matmul %0, %1, %cst {dimension_numbers = #tpu.dot_dimension_numbers<[1], [0], [0], [1], [0, 0, 1, 1], [], []>} : vector<104x36xbf16>, vector<36x128xbf16>, vector<104x128xf32> -> vector<104x128xf32>
    %c0_3 = arith.constant 0 : index
    %c0_4 = arith.constant 0 : index
    %3 = vector.load %arg3[%c0_3, %c0_4] : memref<1x128xf32, #tpu.memory_space<vmem>>, vector<1x128xf32>
    %4 = vector.broadcast %3 : vector<1x128xf32> to vector<104x128xf32>
    %5 = arith.mulf %2, %4 : vector<104x128xf32>
    %c0_5 = arith.constant 0 : index
    %c0_6 = arith.constant 0 : index
    %6 = vector.load %arg4[%c0_5, %c0_6] : memref<1x128xf32, #tpu.memory_space<vmem>>, vector<1x128xf32>
    %7 = vector.broadcast %6 : vector<1x128xf32> to vector<104x128xf32>
    %8 = arith.addf %5, %7 : vector<104x128xf32>
    %cst_7 = arith.constant 0.000000e+00 : f32
    %9 = vector.broadcast %cst_7 : f32 to vector<104x128xf32>
    %10 = arith.maximumf %8, %9 : vector<104x128xf32>
    %c0_8 = arith.constant 0 : index
    %c0_9 = arith.constant 0 : index
    %11 = vector.load %arg5[%c0_8, %c0_9] : memref<104x128xf32, #tpu.memory_space<vmem>>, vector<104x128xf32>
    tpu.vector_store %arg5[%c0_8, %c0_9], %10 {strides = array<i32>} : memref<104x128xf32, #tpu.memory_space<vmem>>, vector<104x128xf32>,
    return
  }
  func.func @transform_0(%arg0: i32) -> (i32, i32) {
    %c0_i32 = arith.constant 0 : i32
    %c0_i32_0 = arith.constant 0 : i32
    return %arg0, %c0_i32 : i32, i32
  }
  func.func @transform_1(%arg0: i32) -> (i32, i32) {
    %c0_i32 = arith.constant 0 : i32
    %c0_i32_0 = arith.constant 0 : i32
    %c0_i32_1 = arith.constant 0 : i32
    return %c0_i32, %c0_i32_0 : i32, i32
  }
  func.func @transform_2(%arg0: i32) -> (i32, i32) {
    %c0_i32 = arith.constant 0 : i32
    %c0_i32_0 = arith.constant 0 : i32
    %c0_i32_1 = arith.constant 0 : i32
    return %c0_i32, %c0_i32_0 : i32, i32
  }
  func.func @transform_3(%arg0: i32) -> (i32, i32) {
    %c0_i32 = arith.constant 0 : i32
    %c0_i32_0 = arith.constant 0 : i32
    %c0_i32_1 = arith.constant 0 : i32
    return %c0_i32, %c0_i32_0 : i32, i32
  }
  func.func @transform_4(%arg0: i32) -> (i32, i32) {
    %c0_i32 = arith.constant 0 : i32
    %c0_i32_0 = arith.constant 0 : i32
    return %arg0, %c0_i32 : i32, i32
  }
}

</mosaic_0001>

<bundles_post_ra>
// kernel: conv_block.1
= control target key start
LH: loop header
LB: loop body
LE: loop exit
PB: predicated region body
PF: predicated region fallthrough
CT: control target
= control target key end

     0   :  { %v349_v0 = vmov 0.0   ;;  %vm350_vm0 = vmmov 0   ;;  %vm106_vm1 = vcmask 1041408   ;;  %vm84_vm2 = vcmask 293888   ;;  %s495_s1 = inlined_call_operand.vmem [shape: bf16[36,128], index: 1, kind: input, shape index: {}]   ;;  %s496_s0 = inlined_call_operand.vmem [shape: bf16[104,36], index: 0, kind: input, shape index: {}]   ;;  %s497_s2 = inlined_call_operand.vmem [shape: f32[1,128], index: 2, kind: input, shape index: {}]   ;;  %s498_s3 = inlined_call_operand.vmem [shape: f32[1,128], index: 3, kind: input, shape index: {}]   ;;  %s499_s4 = inlined_call_operand.vmem [shape: f32[104,128], index: 4, kind: output, shape index: {}]  }
   0x1   :  { %297 = vmatprep.subr.bf16.mxu0 %v349_v0  ;;  %v339_v1 = vld [vmem:[%s495_s1] sm:$0xff]   ;;  %331 = vmatprep.subr.bf16.mxu1 %v349_v0  ;;  %v340_v2 = vld [vmem:[%s495_s1 + $0x8] sm:$0xff]   ;;  %v341_v3 = vld [vmem:[%s495_s1 + $0x10] ss:$0 sps:$4 sm:$0x33]  }
   0x2   :  { %303 = vmatprep.mubr.msk.bf16.mxu0 %vm350_vm0, %v349_v0  ;;  %319 = vmatprep.mubr.msk.bf16.mxu1 %vm350_vm0, %v349_v0  ;;  %v108_v4 = vsel %vm106_vm1, %v341_v3, 0  ;;  %v342_v5 = vld [vmem:[%s496_s0] sm:$0xff]   ;;  %v344_v7 = vld [vmem:[%s496_s0 + $0x8] sm:$0xff]   ;;  %v346_v9 = vld [vmem:[%s496_s0 + $0x10] sm:$0xff]  }
   0x3   :  { %298 = vmatpush3.bf16.msra.mxu0 %v339_v1  ;;  %334 = vmatpush3.bf16.msra.mxu1 %v339_v1  ;;  %v343_v6 = vld [vmem:[%s496_s0 + $0x20] sm:$0xff]   ;;  %v345_v8 = vld [vmem:[%s496_s0 + $0x28] sm:$0xff]   ;;  %v347_v10 = vld [vmem:[%s496_s0 + $0x30] ss:$0 sps:$4 sm:$0xff]  }
   0x4   :  { %299 = vmatprep.subr.bf16.mxu0 %v349_v0  ;;  %332 = vmatprep.subr.bf16.mxu1 %v349_v0  ;;  %v348_v11 = vld [vmem:[%s496_s0 + $0x18] sm:$0xff]   ;;  %v423_v12 = vld [vmem:[%s497_s2] ss:$0 sm:$0xff] }
   0x5   :  { %v428_v14 = vld [vmem:[%s498_s3] ss:$0 sm:$0xff] }
   0x7   :  { %300 = vmatpush3.bf16.msra.mxu0 %v340_v2  ;;  %335 = vmatpush3.bf16.msra.mxu1 %v340_v2 }
   0x8   :  { %301 = vmatprep.subr.bf16.mxu0 %v349_v0  ;;  %333 = vmatprep.subr.bf16.mxu1 %v349_v0 }
   0xb   :  { %302 = vmatpush3.bf16.msra.mxu0 %v108_v4  ;;  %336 = vmatpush3.bf16.msra.mxu1 %v108_v4 }
   0xe   :  { %304 = vmatmul.mubr.msk.bf16.vlgmr.msra.gmra.mrb[0].mxu0 %vm84_vm2, %v342_v5  ;;  %320 = vmatmul.mubr.msk.bf16.vlgmr.msra.gmra.mrb[0].mxu1 %vm84_vm2, %v343_v6 }
   0xf   :  { %307 = vmatprep.mubr.msk.bf16.mxu0 %vm350_vm0, %v349_v0  ;;  %323 = vmatprep.mubr.msk.bf16.mxu1 %vm350_vm0, %v349_v0 }
  0x16   :  { %308 = vmatmul.mubr.msk.bf16.gmra.mrb[4].mxu0 %vm84_vm2, %v344_v7  ;;  %324 = vmatmul.mubr.msk.bf16.gmra.mrb[4].mxu1 %vm84_vm2, %v345_v8 }
  0x17   :  { %311 = vmatprep.mubr.msk.bf16.mxu0 %vm350_vm0, %v349_v0  ;;  %327 = vmatprep.mubr.msk.bf16.mxu1 %vm350_vm0, %v349_v0 }
  0x1e   :  { %312 = vmatmul.mubr.msk.bf16.gmra.mrb[8].mxu0 %vm84_vm2, %v346_v9  ;;  %328 = vmatmul.mubr.msk.bf16.gmra.mrb[8].mxu1 %vm84_vm2, %v347_v10 }
  0x1f   :  { %315 = vmatprep.mubr.msk.bf16.mxu0 %vm350_vm0, %v349_v0 }
  0x26   :  { %316 = vmatmul.mubr.msk.bf16.gmra.mrb[12].mxu0 %vm84_vm2, %v348_v11 }
  0xe1   :  { %v144_v13 = vpop.f32.mrb[0].mxu0  ;;  %v176_v15 = vpop.f32.mrb[0].mxu1 }
  0xe2   :  { %v205_v16 = vmul.f32 %v423_v12, %v144_v13  ;;  %v305_v17 = vpop.f32.mrb[1].mxu0  ;;  %v213_v18 = vmul.f32 %v423_v12, %v176_v15  ;;  %v321_v19 = vpop.f32.mrb[1].mxu1 }
  0xe3   :  { %v147_v20 = vpop.f32.mrb[2].mxu0  ;;  %v179_v21 = vpop.f32.mrb[2].mxu1 }
  0xe4   :  { %v225_v22 = vadd.f32 %v428_v14, %v205_v16  ;;  %v206_v23 = vmul.f32 %v423_v12, %v147_v20  ;;  %v306_v24 = vpop.f32.mrb[3].mxu0  ;;  %v233_v25 = vadd.f32 %v428_v14, %v213_v18  ;;  %v214_v26 = vmul.f32 %v423_v12, %v179_v21  ;;  %v322_v27 = vpop.f32.mrb[3].mxu1 }
  0xe6   :  { %v238_v28 = vmax.f32 %v225_v22, 0.0  ;;  %v226_v29 = vadd.f32 %v428_v14, %v206_v23  ;;  %v246_v30 = vmax.f32 %v233_v25, 0.0  ;;  %v234_v31 = vadd.f32 %v428_v14, %v214_v26 }
  0xe8   :  { %251 = vst [vmem:[%s499_s4] sm:$0xff] %v238_v28  ;;  %v239_v32 = vmax.f32 %v226_v29, 0.0  ;;  %259 = vst [vmem:[%s499_s4 + $0x40] sm:$0xff] %v246_v30  ;;  %v247_v33 = vmax.f32 %v234_v31, 0.0 }
  0xe9   :  { %v152_v34 = vpop.f32.mrb[4].mxu0  ;;  %v184_v35 = vpop.f32.mrb[4].mxu1 }
  0xea   :  { %252 = vst [vmem:[%s499_s4 + $0x8] sm:$0xff] %v239_v32  ;;  %v207_v36 = vmul.f32 %v423_v12, %v152_v34  ;;  %v309_v37 = vpop.f32.mrb[5].mxu0  ;;  %260 = vst [vmem:[%s499_s4 + $0x48] sm:$0xff] %v247_v33  ;;  %v215_v38 = vmul.f32 %v423_v12, %v184_v35  ;;  %v325_v39 = vpop.f32.mrb[5].mxu1 }
  0xeb   :  { %v155_v40 = vpop.f32.mrb[6].mxu0  ;;  %v187_v41 = vpop.f32.mrb[6].mxu1 }
  0xec   :  { %v227_v42 = vadd.f32 %v428_v14, %v207_v36  ;;  %v208_v43 = vmul.f32 %v423_v12, %v155_v40  ;;  %v310_v44 = vpop.f32.mrb[7].mxu0  ;;  %v235_v45 = vadd.f32 %v428_v14, %v215_v38  ;;  %v216_v46 = vmul.f32 %v423_v12, %v187_v41  ;;  %v326_v47 = vpop.f32.mrb[7].mxu1 }
  0xee   :  { %v240_v48 = vmax.f32 %v227_v42, 0.0  ;;  %v228_v49 = vadd.f32 %v428_v14, %v208_v43  ;;  %v248_v50 = vmax.f32 %v235_v45, 0.0  ;;  %v236_v51 = vadd.f32 %v428_v14, %v216_v46 }
  0xf0   :  { %253 = vst [vmem:[%s499_s4 + $0x10] sm:$0xff] %v240_v48  ;;  %v241_v52 = vmax.f32 %v228_v49, 0.0  ;;  %261 = vst [vmem:[%s499_s4 + $0x50] sm:$0xff] %v248_v50  ;;  %v249_v53 = vmax.f32 %v236_v51, 0.0 }
  0xf1   :  { %v160_v54 = vpop.f32.mrb[8].mxu0  ;;  %v192_v55 = vpop.f32.mrb[8].mxu1 }
  0xf2   :  { %254 = vst [vmem:[%s499_s4 + $0x18] sm:$0xff] %v241_v52  ;;  %v209_v56 = vmul.f32 %v423_v12, %v160_v54  ;;  %v313_v57 = vpop.f32.mrb[9].mxu0  ;;  %262 = vst [vmem:[%s499_s4 + $0x58] sm:$0xff] %v249_v53  ;;  %v217_v58 = vmul.f32 %v423_v12, %v192_v55  ;;  %v329_v59 = vpop.f32.mrb[9].mxu1 }
  0xf3   :  { %v163_v60 = vpop.f32.mrb[10].mxu0  ;;  %v195_v61 = vpop.f32.mrb[10].mxu1 }
  0xf4   :  { %v229_v62 = vadd.f32 %v428_v14, %v209_v56  ;;  %v210_v63 = vmul.f32 %v423_v12, %v163_v60  ;;  %v314_v0 = vpop.f32.mrb[11].mxu0  ;;  %v237_v1 = vadd.f32 %v428_v14, %v217_v58  ;;  %v330_v2 = vpop.f32.mrb[11].mxu1 }
  0xf6   :  { %v242_v3 = vmax.f32 %v229_v62, 0.0  ;;  %v230_v4 = vadd.f32 %v428_v14, %v210_v63  ;;  %v250_v5 = vmax.f32 %v237_v1, 0.0 }
  0xf8   :  { %255 = vst [vmem:[%s499_s4 + $0x20] sm:$0xff] %v242_v3  ;;  %v243_v6 = vmax.f32 %v230_v4, 0.0  ;;  %263 = vst [vmem:[%s499_s4 + $0x60] sm:$0xff] %v250_v5 }
  0xf9   :  { %v168_v7 = vpop.f32.mrb[12].mxu0 }
  0xfa   :  { %256 = vst [vmem:[%s499_s4 + $0x28] sm:$0xff] %v243_v6  ;;  %v211_v8 = vmul.f32 %v423_v12, %v168_v7  ;;  %v317_v9 = vpop.f32.mrb[13].mxu0 }
  0xfb   :  { %v171_v10 = vpop.f32.mrb[14].mxu0 }
  0xfc   :  { %v231_v11 = vadd.f32 %v428_v14, %v211_v8  ;;  %v212_v13 = vmul.f32 %v423_v12, %v171_v10  ;;  %v318_v15 = vpop.f32.mrb[15].mxu0 }
  0xfe   :  { %v244_v16 = vmax.f32 %v231_v11, 0.0  ;;  %v232_v17 = vadd.f32 %v428_v14, %v212_v13 }
 0x100   :  { %257 = vst [vmem:[%s499_s4 + $0x30] sm:$0xff] %v244_v16  ;;  %v245_v18 = vmax.f32 %v232_v17, 0.0 }
 0x102   :  { %258 = vst [vmem:[%s499_s4 + $0x38] sm:$0xff] %v245_v18 }

</bundles_post_ra>
